<compile_context>
chip_gen: v7x
topology: tpu7x:2x2x1
jax: 0.10.0
libtpu: 0.0.40
codegen_flags: <defaults>
</compile_context>

<pallas_src>
import jax
import jax.numpy as jnp
from jax.experimental import pallas as pl
from jax.experimental.pallas import tpu as pltpu


HEAD_PAD = 128  # fused cls(22) + reg(4) head, padded to one 128-lane output


# ----------------------------------------------------------------------------
# Pallas kernel: fc1+ReLU -> fc2+ReLU -> fused head, one ROI row-tile per step
# ----------------------------------------------------------------------------
def bbox_head_kernel(x_ref, w1_ref, b1_ref, w2_ref, b2_ref, wh_ref, bh_ref,
                     out_ref):
    # shared fc 1 + ReLU (bf16 MXU inputs, f32 accumulate + f32 epilogue)
    h = jnp.dot(x_ref[...], w1_ref[...],
                preferred_element_type=jnp.float32) + b1_ref[...]
    h = jnp.maximum(h, 0.0).astype(jnp.bfloat16)

    # shared fc 2 + ReLU
    h = jnp.dot(h, w2_ref[...],
                preferred_element_type=jnp.float32) + b2_ref[...]
    h = jnp.maximum(h, 0.0).astype(jnp.bfloat16)

    # fused classification + regression head -> single lane-dense 128-wide store
    out_ref[...] = (jnp.dot(h, wh_ref[...],
                            preferred_element_type=jnp.float32)
                    + bh_ref[...]).astype(out_ref.dtype)


# ----------------------------------------------------------------------------
# Wrapper
# ----------------------------------------------------------------------------
def bbox_head_forward(x_nchw, params, *, tile_n=128):
    """x_nchw: (num_rois, in_channels, roi_h, roi_w) float32."""
    w1, b1, w2, b2, wc, bc, wr, br = params

    n = x_nchw.shape[0]
    f_in = x_nchw.shape[1] * x_nchw.shape[2] * x_nchw.shape[3]
    fc_out = w1.shape[1]
    n_cls = wc.shape[1]
    n_reg = wr.shape[1]
    assert n_cls + n_reg <= HEAD_PAD

    # ---- fuse + zero-pad the two heads into one lane-dense weight/bias ----
    wh = jnp.zeros((fc_out, HEAD_PAD), jnp.float32)
    wh = wh.at[:, :n_cls].set(wc).at[:, n_cls:n_cls + n_reg].set(wr)
    bh = jnp.zeros((1, HEAD_PAD), jnp.float32)
    bh = bh.at[:, :n_cls].set(bc).at[:, n_cls:n_cls + n_reg].set(br)

    # ---- flatten(1), bf16 matmul operands (biases stay f32) ----
    x = x_nchw.reshape(n, f_in).astype(jnp.bfloat16)
    w1b = w1.astype(jnp.bfloat16)
    w2b = w2.astype(jnp.bfloat16)
    whb = wh.astype(jnp.bfloat16)

    # ---- pad ROI rows so the row grid tiles evenly ----
    tile_n = min(tile_n, max(8, ((n + 7) // 8) * 8))
    n_pad = ((n + tile_n - 1) // tile_n) * tile_n
    if n_pad != n:
        x = jnp.pad(x, ((0, n_pad - n), (0, 0)))

    grid = (n_pad // tile_n,)

    def row_spec(shape):
        return pl.BlockSpec(shape, lambda i: (i, 0))

    def resident_spec(shape):          # same block every step -> stays in VMEM
        return pl.BlockSpec(shape, lambda i: (0, 0))

    out = pl.pallas_call(
        bbox_head_kernel,
        out_shape=jax.ShapeDtypeStruct((n_pad, HEAD_PAD), jnp.float32),
        grid=grid,
        in_specs=[
            row_spec((tile_n, f_in)),                # x  (double-buffered)
            resident_spec((f_in, fc_out)),           # w1
            resident_spec((1, fc_out)),              # b1
            resident_spec((fc_out, fc_out)),         # w2
            resident_spec((1, fc_out)),              # b2
            resident_spec((fc_out, HEAD_PAD)),       # fused head weight
            resident_spec((1, HEAD_PAD)),            # fused head bias
        ],
        out_specs=row_spec((tile_n, HEAD_PAD)),
        compiler_params=pltpu.CompilerParams(
            dimension_semantics=("parallel",),
            vmem_limit_bytes=64 * 1024 * 1024,
        ),
    )(x, w1b, b1, w2b, b2, whb, bh)

    fused = out[:n]
    cls_score = fused[:, :n_cls]
    bbox_pred = fused[:, n_cls:n_cls + n_reg]
    return cls_score, bbox_pred


# ----------------------------------------------------------------------------
# Deterministic parameter construction (mimics nn.Linear shapes / init)
# ----------------------------------------------------------------------------
def make_params(key, in_features, fc_out_channels, num_classes):
    ks = jax.random.split(key, 8)

    def linear(kw, kb, fan_in, fan_out):
        bound = 1.0 / jnp.sqrt(jnp.float32(fan_in))
        # PyTorch stores (out, in); we transpose to (in, out) for the kernel.
        w = jax.random.uniform(kw, (fan_out, fan_in), jnp.float32, -bound, bound).T
        b = jax.random.uniform(kb, (1, fan_out), jnp.float32, -bound, bound)
        return w, b

    w1, b1 = linear(ks[0], ks[1], in_features, fc_out_channels)
    w2, b2 = linear(ks[2], ks[3], fc_out_channels, fc_out_channels)
    wc, bc = linear(ks[4], ks[5], fc_out_channels, num_classes + 1)
    wr, br = linear(ks[6], ks[7], fc_out_channels, 4)
    return (w1, b1, w2, b2, wc, bc, wr, br)


# Pure-JAX f32 reference for correctness checking.
def reference_forward(x_nchw, params):
    w1, b1, w2, b2, wc, bc, wr, br = params
    x = x_nchw.reshape(x_nchw.shape[0], -1)
    h = jnp.maximum(x @ w1 + b1, 0.0)
    h = jnp.maximum(h @ w2 + b2, 0.0)
    return h @ wc + bc, h @ wr + br


# TODO(synk): loss/get_targets/accuracy/get_bboxes (NMS, bbox_coder decode)
# are training/post-processing paths, not part of forward(); not kernelized.
if __name__ == "__main__":
    config = dict(roi_feat_size=4, in_channels=4, fc_out_channels=128)
    num_classes = 21
    roi_feat_area = config["roi_feat_size"] ** 2
    in_features = config["in_channels"] * roi_feat_area        # 4 * 16 = 64

    num_rois = 256                                             # 2 row tiles of 128
    key = jax.random.PRNGKey(0)
    kx, kp = jax.random.split(key)

    # ROI feature maps, NCHW like the PyTorch module expects.
    x = jax.random.normal(
        kx, (num_rois, config["in_channels"],
             config["roi_feat_size"], config["roi_feat_size"]), jnp.float32)

    params = make_params(kp, in_features, config["fc_out_channels"], num_classes)

    cls_score, bbox_pred = bbox_head_forward(x, params)
    jax.block_until_ready((cls_score, bbox_pred))

    ref_cls, ref_reg = reference_forward(x, params)
    assert cls_score.shape == (num_rois, num_classes + 1)
    assert bbox_pred.shape == (num_rois, 4)
    # bf16 matmul inputs with f32 accumulation -> loosened tolerance vs f32 ref
    assert jnp.allclose(cls_score, ref_cls, atol=2e-2, rtol=2e-2)
    assert jnp.allclose(bbox_pred, ref_reg, atol=2e-2, rtol=2e-2)

    print("KERNEL_OK")
</pallas_src>

<mosaic_0001>
module attributes {stable_mosaic.version = 11 : i64} {
  func.func @bbox_head_kernel(%arg0: i32, %arg1: memref<128x64xbf16, #tpu.memory_space<vmem>>, %arg2: memref<64x128xbf16, #tpu.memory_space<vmem>>, %arg3: memref<1x128xf32, #tpu.memory_space<vmem>>, %arg4: memref<128x128xbf16, #tpu.memory_space<vmem>>, %arg5: memref<1x128xf32, #tpu.memory_space<vmem>>, %arg6: memref<128x128xbf16, #tpu.memory_space<vmem>>, %arg7: memref<1x128xf32, #tpu.memory_space<vmem>>, %arg8: memref<128x128xf32, #tpu.memory_space<vmem>>) attributes {dimension_semantics = [#tpu.dimension_semantics<parallel>], iteration_bounds = array<i64: 2>, scalar_prefetch = 0 : i64, scratch_operands = 0 : i64, tpu.core_type = #tpu.core_type<tc>, window_params = [{transform_indices = @transform_0, window_bounds = array<i64: 128, 64>}, {pipeline_mode = #tpu.pipeline_mode<synchronous>, transform_indices = @transform_1, window_bounds = array<i64: 64, 128>}, {pipeline_mode = #tpu.pipeline_mode<synchronous>, transform_indices = @transform_2, window_bounds = array<i64: 1, 128>}, {pipeline_mode = #tpu.pipeline_mode<synchronous>, transform_indices = @transform_3, window_bounds = array<i64: 128, 128>}, {pipeline_mode = #tpu.pipeline_mode<synchronous>, transform_indices = @transform_4, window_bounds = array<i64: 1, 128>}, {pipeline_mode = #tpu.pipeline_mode<synchronous>, transform_indices = @transform_5, window_bounds = array<i64: 128, 128>}, {pipeline_mode = #tpu.pipeline_mode<synchronous>, transform_indices = @transform_6, window_bounds = array<i64: 1, 128>}, {transform_indices = @transform_7, window_bounds = array<i64: 128, 128>}]} {
    %c0 = arith.constant 0 : index
    %c0_0 = arith.constant 0 : index
    %0 = vector.load %arg1[%c0, %c0_0] : memref<128x64xbf16, #tpu.memory_space<vmem>>, vector<128x64xbf16>
    %c0_1 = arith.constant 0 : index
    %c0_2 = arith.constant 0 : index
    %1 = vector.load %arg2[%c0_1, %c0_2] : memref<64x128xbf16, #tpu.memory_space<vmem>>, vector<64x128xbf16>
    %cst = arith.constant dense<0.000000e+00> : vector<128x128xf32>
    %2 = tpu.matmul %0, %1, %cst {dimension_numbers = #tpu.dot_dimension_numbers<[1], [0], [0], [1], [0, 0, 1, 1], [], []>} : vector<128x64xbf16>, vector<64x128xbf16>, vector<128x128xf32> -> vector<128x128xf32>
    %c0_3 = arith.constant 0 : index
    %c0_4 = arith.constant 0 : index
    %3 = vector.load %arg3[%c0_3, %c0_4] : memref<1x128xf32, #tpu.memory_space<vmem>>, vector<1x128xf32>
    %4 = vector.broadcast %3 : vector<1x128xf32> to vector<128x128xf32>
    %5 = arith.addf %2, %4 : vector<128x128xf32>
    %cst_5 = arith.constant 0.000000e+00 : f32
    %6 = vector.broadcast %cst_5 : f32 to vector<128x128xf32>
    %7 = arith.maximumf %5, %6 : vector<128x128xf32>
    %8 = arith.truncf %7 : vector<128x128xf32> to vector<128x128xbf16>
    %c0_6 = arith.constant 0 : index
    %c0_7 = arith.constant 0 : index
    %9 = vector.load %arg4[%c0_6, %c0_7] : memref<128x128xbf16, #tpu.memory_space<vmem>>, vector<128x128xbf16>
    %cst_8 = arith.constant dense<0.000000e+00> : vector<128x128xf32>
    %10 = tpu.matmul %8, %9, %cst_8 {dimension_numbers = #tpu.dot_dimension_numbers<[1], [0], [0], [1], [0, 0, 1, 1], [], []>} : vector<128x128xbf16>, vector<128x128xbf16>, vector<128x128xf32> -> vector<128x128xf32>
    %c0_9 = arith.constant 0 : index
    %c0_10 = arith.constant 0 : index
    %11 = vector.load %arg5[%c0_9, %c0_10] : memref<1x128xf32, #tpu.memory_space<vmem>>, vector<1x128xf32>
    %12 = vector.broadcast %11 : vector<1x128xf32> to vector<128x128xf32>
    %13 = arith.addf %10, %12 : vector<128x128xf32>
    %cst_11 = arith.constant 0.000000e+00 : f32
    %14 = vector.broadcast %cst_11 : f32 to vector<128x128xf32>
    %15 = arith.maximumf %13, %14 : vector<128x128xf32>
    %16 = arith.truncf %15 : vector<128x128xf32> to vector<128x128xbf16>
    %c0_12 = arith.constant 0 : index
    %c0_13 = arith.constant 0 : index
    %17 = vector.load %arg6[%c0_12, %c0_13] : memref<128x128xbf16, #tpu.memory_space<vmem>>, vector<128x128xbf16>
    %cst_14 = arith.constant dense<0.000000e+00> : vector<128x128xf32>
    %18 = tpu.matmul %16, %17, %cst_14 {dimension_numbers = #tpu.dot_dimension_numbers<[1], [0], [0], [1], [0, 0, 1, 1], [], []>} : vector<128x128xbf16>, vector<128x128xbf16>, vector<128x128xf32> -> vector<128x128xf32>
    %c0_15 = arith.constant 0 : index
    %c0_16 = arith.constant 0 : index
    %19 = vector.load %arg7[%c0_15, %c0_16] : memref<1x128xf32, #tpu.memory_space<vmem>>, vector<1x128xf32>
    %20 = vector.broadcast %19 : vector<1x128xf32> to vector<128x128xf32>
    %21 = arith.addf %18, %20 : vector<128x128xf32>
    %c0_17 = arith.constant 0 : index
    %c0_18 = arith.constant 0 : index
    %22 = vector.load %arg8[%c0_17, %c0_18] : memref<128x128xf32, #tpu.memory_space<vmem>>, vector<128x128xf32>
    tpu.vector_store %arg8[%c0_17, %c0_18], %21 {strides = array<i32>} : memref<128x128xf32, #tpu.memory_space<vmem>>, vector<128x128xf32>,
    return
  }
  func.func @transform_0(%arg0: i32) -> (i32, i32) {
    %c0_i32 = arith.constant 0 : i32
    %c0_i32_0 = arith.constant 0 : i32
    return %arg0, %c0_i32 : i32, i32
  }
  func.func @transform_1(%arg0: i32) -> (i32, i32) {
    %c0_i32 = arith.constant 0 : i32
    %c0_i32_0 = arith.constant 0 : i32
    %c0_i32_1 = arith.constant 0 : i32
    return %c0_i32, %c0_i32_0 : i32, i32
  }
  func.func @transform_2(%arg0: i32) -> (i32, i32) {
    %c0_i32 = arith.constant 0 : i32
    %c0_i32_0 = arith.constant 0 : i32
    %c0_i32_1 = arith.constant 0 : i32
    return %c0_i32, %c0_i32_0 : i32, i32
  }
  func.func @transform_3(%arg0: i32) -> (i32, i32) {
    %c0_i32 = arith.constant 0 : i32
    %c0_i32_0 = arith.constant 0 : i32
    %c0_i32_1 = arith.constant 0 : i32
    return %c0_i32, %c0_i32_0 : i32, i32
  }
  func.func @transform_4(%arg0: i32) -> (i32, i32) {
    %c0_i32 = arith.constant 0 : i32
    %c0_i32_0 = arith.constant 0 : i32
    %c0_i32_1 = arith.constant 0 : i32
    return %c0_i32, %c0_i32_0 : i32, i32
  }
  func.func @transform_5(%arg0: i32) -> (i32, i32) {
    %c0_i32 = arith.constant 0 : i32
    %c0_i32_0 = arith.constant 0 : i32
    %c0_i32_1 = arith.constant 0 : i32
    return %c0_i32, %c0_i32_0 : i32, i32
  }
  func.func @transform_6(%arg0: i32) -> (i32, i32) {
    %c0_i32 = arith.constant 0 : i32
    %c0_i32_0 = arith.constant 0 : i32
    %c0_i32_1 = arith.constant 0 : i32
    return %c0_i32, %c0_i32_0 : i32, i32
  }
  func.func @transform_7(%arg0: i32) -> (i32, i32) {
    %c0_i32 = arith.constant 0 : i32
    %c0_i32_0 = arith.constant 0 : i32
    return %arg0, %c0_i32 : i32, i32
  }
}

</mosaic_0001>

<bundles_post_ra>
// kernel: tpu_custom_call.1
= control target key start
LH: loop header
LB: loop body
LE: loop exit
PB: predicated region body
PF: predicated region fallthrough
CT: control target
= control target key end

     0   :  { %12 = vsyncpa [#allocation3], 0  ;;  %s2237_s0 = inlined_call_operand.hbm [shape: bf16[256,64], index: 0, kind: input, shape index: {}]   ;;  %s2238_s1 = inlined_call_operand.hbm [shape: bf16[64,128], index: 1, kind: input, shape index: {}]   ;;  %s2239_s2 = inlined_call_operand.hbm [shape: f32[1,128], index: 2, kind: input, shape index: {}]   ;;  %s2240_s3 = inlined_call_operand.hbm [shape: bf16[128,128], index: 3, kind: input, shape index: {}]   ;;  %s2241_s4 = inlined_call_operand.hbm [shape: f32[1,128], index: 4, kind: input, shape index: {}]   ;;  %s2242_s5 = inlined_call_operand.hbm [shape: bf16[128,128], index: 5, kind: input, shape index: {}]   ;;  %s2243_s6 = inlined_call_operand.hbm [shape: f32[1,128], index: 6, kind: input, shape index: {}]   ;;  %s2244_s7 = inlined_call_operand.hbm [shape: f32[256,128], index: 7, kind: output, shape index: {}]  }
   0x1   :  { %14 = vsyncpa [#allocation3 + $0x1], 0 }
   0x2   :  { %15 = vsyncpa [#allocation6], 0 }
   0x3   :  { %16 = vsyncpa [#allocation9], 0 }
   0x4   :  { %17 = vsyncpa [#allocation12], 0 }
   0x5   :  { %18 = vsyncpa [#allocation4], 0 }
   0x6   :  { %20 = vsyncpa [#allocation4 + $0x1], 0  ;;  %s1826_s24 = smov 0   ;;  %s1828_s25 = smov 0  }
   0x7   :  { %s1830_s26 = smov 0   ;;  %s1832_s27 = smov 0  }
   0x8 LB: > { %s1774_s28 = smov [#allocation5]   ;;  %s1847_s30 = sadd.s32 4294967295, %s1772_s27   ;;  %s1772_s27 = sphi %s1832_s27, %s2272_s27   ;;  %s1768_s26 = sphi %s1830_s26, %s2271_s26   ;;  %s1764_s25 = sphi %s1828_s25, %s2270_s25   ;;  %s1760_s24 = sphi %s1826_s24, %s2269_s24  }
   0x9   : > { %s221_s29 = sshll.u32 %s1774_s28, 4  ;;  %p1143_p0 = scmp.ge.s32.totalorder %s1772_s27, 1  ;;  %s1852_s29 = int_to_ptr.vmem [resolvable:$true] %s221_s29 }
   0xa   : > { %p2245_p1 = scmp.eq.s32.totalorder %s1847_s30, 0  ;;  %p209_p2 = scmp.lt.s32.totalorder %s1772_s27, 3 }
   0xb   : > { %s1775_s9 = smov [#allocation8]   ;;  %s1776_s12 = smov [#allocation11]  }
   0xc   : > { %p1854_p3 = pnand %p1143_p0, %p209_p2  ;;  %s245_s10 = sshll.u32 %s1775_s9, 4  ;;  %s1867_s10 = int_to_ptr.vmem [resolvable:$true] %s245_s10 }
   0xd   : > { %s269_s13 = sshll.u32 %s1776_s12, 4  ;;  %s1496_s16 = scalar_lea.hbm %s2238_s1, 512  ;;  %s1869_s13 = int_to_ptr.vmem [resolvable:$true] %s269_s13 }
   0xe   : > { %s2249_s8 = scalar_select %p1854_p3, 1, 0 }
   0xf   : > { %p1385_p5 = pneg %p1854_p3  ;;  %p1497_p7 = scmp.ne.s32.totalorder %s2238_s1, %s1496_s16 }
  0x10   : > { %p1503_p11 = scmp.lt.u32.totalorder %s1496_s16, %s2238_s1 }
  0x11   : > { %p1863_p6 = pnand %p1385_p5, %p2245_p1 }
  0x13   : > { %p1879_p8 = pneg %p1863_p6 }
  0x15   : > { %p1499_p9 = pnand %p1879_p8, %p1497_p7 }
  0x17   : > { %p1500_p10 = pneg %p1499_p9 }
  0x19   : > { %p1505_p12 = pnand %p1503_p11, %p1500_p10 }
  0x1b   : > { %1508 = shalt.err (!%p1505_p12)
}
  0x1c   : > { %s1509_s22 = scalar_lea.vmem %s1852_s29, 512  ;;  %p1517_p5 = scmp.lt.s32.totalorder %s1852_s29, %s1852_s29 }
  0x1d   : > { %p1510_p13 = scmp.ne.s32.totalorder %s1852_s29, %s1509_s22  ;;  %p1518_p4 = scmp.lt.s32.totalorder %s1509_s22, %s1509_s22 }
  0x1f   : > { %p1512_p0 = pnand %p1510_p13, %p1879_p8  ;;  %p1519_p7 = por %p1518_p4, %p1517_p5 }
  0x21   : > { %p1513_p2 = pneg %p1512_p0 }
  0x23   : > { %p1520_p9 = pnand %p1519_p7, %p1513_p2 }
  0x25   : > { %1523 = shalt.err (!%p1520_p9)
}
  0x26   : > { %s2247_s23 = smov 64   ;;  %s1778_s28 = smov 4  }
  0x27   : > { %1388 = dma.hbm_to_vmem [thread:$0]  (!%p1863_p6), %s2238_s1, 512, %s1852_s29, [#allocation6], %s2247_s23, %s2247_s23, %s1778_s28  }
  0x28   : > { %s1524_s16 = scalar_lea.hbm %s2240_s3, 1024 }
  0x29   : > { %p1525_p4 = scmp.ne.s32.totalorder %s2240_s3, %s1524_s16  ;;  %p1531_p12 = scmp.lt.u32.totalorder %s1524_s16, %s2240_s3 }
  0x2b   : > { %p1527_p10 = pnand %p1525_p4, %p1879_p8 }
  0x2d   : > { %p1528_p11 = pneg %p1527_p10 }
  0x2f   : > { %p1533_p13 = pnand %p1531_p12, %p1528_p11 }
  0x31   : > { %1536 = shalt.err (!%p1533_p13)
}
  0x32   : > { %s1537_s29 = scalar_lea.vmem %s1867_s10, 1024  ;;  %p1545_p7 = scmp.lt.s32.totalorder %s1867_s10, %s1867_s10 }
  0x33   : > { %p1538_p0 = scmp.ne.s32.totalorder %s1867_s10, %s1537_s29  ;;  %p1546_p9 = scmp.lt.s32.totalorder %s1537_s29, %s1537_s29 }
  0x35   : > { %p1540_p2 = pnand %p1538_p0, %p1879_p8  ;;  %p1547_p4 = por %p1546_p9, %p1545_p7 }
  0x37   : > { %p1541_p5 = pneg %p1540_p2 }
  0x39   : > { %p1548_p10 = pnand %p1547_p4, %p1541_p5 }
  0x3b   : > { %1551 = shalt.err (!%p1548_p10)
}
  0x3c   : > { %1394 = dma.hbm_to_vmem [thread:$0]  (!%p1863_p6), %s2240_s3, 1024, %s1867_s10, [#allocation9], %s2247_s23, %s2247_s23, %s1778_s28  }
  0x3d   : > { %s1552_s15 = scalar_lea.hbm %s2242_s5, 1024 }
  0x3e   : > { %p1553_p11 = scmp.ne.s32.totalorder %s2242_s5, %s1552_s15  ;;  %p1559_p0 = scmp.lt.u32.totalorder %s1552_s15, %s2242_s5 }
  0x40   : > { %p1555_p12 = pnand %p1553_p11, %p1879_p8 }
  0x42   : > { %p1556_p13 = pneg %p1555_p12 }
  0x44   : > { %p1561_p2 = pnand %p1559_p0, %p1556_p13 }
  0x46   : > { %1564 = shalt.err (!%p1561_p2)
}
  0x47   : > { %s1565_s10 = scalar_lea.vmem %s1869_s13, 1024  ;;  %p1573_p4 = scmp.lt.s32.totalorder %s1869_s13, %s1869_s13 }
  0x48   : > { %p1566_p5 = scmp.ne.s32.totalorder %s1869_s13, %s1565_s10  ;;  %p1574_p10 = scmp.lt.s32.totalorder %s1565_s10, %s1565_s10 }
  0x4a   : > { %p1568_p7 = pnand %p1566_p5, %p1879_p8  ;;  %p1575_p11 = por %p1574_p10, %p1573_p4 }
  0x4c   : > { %p1569_p9 = pneg %p1568_p7 }
  0x4e   : > { %p1576_p12 = pnand %p1575_p11, %p1569_p9 }
  0x50   : > { %1579 = shalt.err (!%p1576_p12)
}
  0x51   : > { %1400 = dma.hbm_to_vmem [thread:$0]  (!%p1863_p6), %s2242_s5, 1024, %s1869_s13, [#allocation12], %s2247_s23, %s2247_s23, %s1778_s28  }
  0x52   : > { %s1779_s22 = smov [#allocation7]   ;;  %s1780_s12 = smov [#allocation10]  }
  0x53   : > { %s235_s9 = sshll.u32 %s1779_s22, 4  ;;  %s259_s14 = sshll.u32 %s1780_s12, 4  ;;  %s236_s9 = int_to_ptr.vmem [resolvable:$true] %s235_s9  ;;  %s260_s14 = int_to_ptr.vmem [resolvable:$true] %s259_s14 }
  0x54   : > { %s1580_s17 = scalar_lea.hbm %s2239_s2, 16 }
  0x55   : > { %p1581_p13 = scmp.ne.s32.totalorder %s2239_s2, %s1580_s17  ;;  %p1587_p5 = scmp.lt.u32.totalorder %s1580_s17, %s2239_s2 }
  0x57   : > { %p1583_p0 = pnand %p1581_p13, %p1879_p8 }
  0x59   : > { %p1584_p2 = pneg %p1583_p0 }
  0x5b   : > { %p1589_p7 = pnand %p1587_p5, %p1584_p2 }
  0x5d   : > { %1592 = shalt.err (!%p1589_p7)
}
  0x5e   : > { %s1593_s13 = scalar_lea.vmem %s236_s9, 16  ;;  %s1600_s29 = scalar_lea.vmem %s236_s9, 32 }
  0x5f   : > { %p1594_p9 = scmp.ne.s32.totalorder %s236_s9, %s1593_s13  ;;  %p1601_p11 = scmp.lt.s32.totalorder %s236_s9, %s236_s9 }
  0x60   : > { %p1602_p12 = scmp.lt.s32.totalorder %s1600_s29, %s1593_s13 }
  0x61   : > { %p1596_p4 = pnand %p1594_p9, %p1879_p8 }
  0x62   : > { %p1603_p1 = por %p1602_p12, %p1601_p11 }
  0x63   : > { %p1597_p10 = pneg %p1596_p4 }
  0x65   : > { %p1604_p3 = pnand %p1603_p1, %p1597_p10 }
  0x67   : > { %1607 = shalt.err (!%p1604_p3)
}
  0x68   : > { %1391 = dma.hbm_to_vmem [thread:$0]  (!%p1863_p6), %s2239_s2, 16, %s236_s9, [#allocation6]  }
  0x69   : > { %s1608_s17 = scalar_lea.hbm %s2241_s4, 16 }
  0x6a   : > { %p1609_p13 = scmp.ne.s32.totalorder %s2241_s4, %s1608_s17  ;;  %p1615_p3 = scmp.lt.u32.totalorder %s1608_s17, %s2241_s4 }
  0x6c   : > { %p1611_p0 = pnand %p1609_p13, %p1879_p8 }
  0x6e   : > { %p1612_p1 = pneg %p1611_p0 }
  0x70   : > { %p1617_p2 = pnand %p1615_p3, %p1612_p1 }
  0x72   : > { %1620 = shalt.err (!%p1617_p2)
}
  0x73   : > { %s1621_s13 = scalar_lea.vmem %s260_s14, 16  ;;  %s1628_s9 = scalar_lea.vmem %s260_s14, 32 }
  0x74   : > { %p1622_p5 = scmp.ne.s32.totalorder %s260_s14, %s1621_s13  ;;  %p1629_p4 = scmp.lt.s32.totalorder %s260_s14, %s260_s14 }
  0x75   : > { %p1630_p10 = scmp.lt.s32.totalorder %s1628_s9, %s1621_s13 }
  0x76   : > { %p1624_p7 = pnand %p1622_p5, %p1879_p8 }
  0x77   : > { %p1631_p11 = por %p1630_p10, %p1629_p4 }
  0x78   : > { %p1625_p9 = pneg %p1624_p7 }
  0x7a   : > { %p1632_p12 = pnand %p1631_p11, %p1625_p9 }
  0x7c   : > { %1635 = shalt.err (!%p1632_p12)
}
  0x7d   : > { %1397 = dma.hbm_to_vmem [thread:$0]  (!%p1863_p6), %s2241_s4, 16, %s260_s14, [#allocation9]  }
  0x7e   : > { %s1781_s12 = smov [#allocation13]   ;;  %s1636_s18 = scalar_lea.hbm %s2243_s6, 16 }
  0x7f   : > { %s283_s15 = sshll.u32 %s1781_s12, 4  ;;  %p1637_p13 = scmp.ne.s32.totalorder %s2243_s6, %s1636_s18  ;;  %s284_s15 = int_to_ptr.vmem [resolvable:$true] %s283_s15 }
  0x80   : > { %p1643_p3 = scmp.lt.u32.totalorder %s1636_s18, %s2243_s6 }
  0x81   : > { %p1639_p0 = pnand %p1637_p13, %p1879_p8 }
  0x83   : > { %p1640_p1 = pneg %p1639_p0 }
  0x85   : > { %p1645_p2 = pnand %p1643_p3, %p1640_p1 }
  0x87   : > { %1648 = shalt.err (!%p1645_p2)
}
  0x88   : > { %s1649_s14 = scalar_lea.vmem %s284_s15, 16  ;;  %s1656_s9 = scalar_lea.vmem %s284_s15, 32 }
  0x89   : > { %p1650_p5 = scmp.ne.s32.totalorder %s284_s15, %s1649_s14  ;;  %p1657_p4 = scmp.lt.s32.totalorder %s284_s15, %s284_s15 }
  0x8a   : > { %p1658_p10 = scmp.lt.s32.totalorder %s1656_s9, %s1649_s14 }
  0x8b   : > { %p1652_p7 = pnand %p1650_p5, %p1879_p8 }
  0x8c   : > { %p1659_p11 = por %p1658_p10, %p1657_p4 }
  0x8d   : > { %p1653_p9 = pneg %p1652_p7 }
  0x8f   : > { %p1660_p12 = pnand %p1659_p11, %p1653_p9 }
  0x91   : > { %1663 = shalt.err (!%p1660_p12)
}
  0x92   : > { %1403 = dma.hbm_to_vmem [thread:$0]  (!%p1863_p6), %s2243_s6, 16, %s284_s15, [#allocation12]  }
  0x93   : > { %s1142_s19 = sadd.s32 4294967294, %s1772_s27   ;;  %s2011_s11 = sadd.s32 1, %s1772_s27  }
  0x94   : > { %s30_s12 = ssub.s32 %s1772_s27, %s2011_s11  ;;  %s33_s16 = sadd.s32 1, %s1768_s26 }
  0x95   : > { %p31_p8 = scmp.eq.s32.totalorder %s30_s12, 0  ;;  %p40_p13 = scmp.ne.s32.totalorder %s1768_s26, %s1764_s25 }
  0x96   : > { %p41_p0 = scmp.eq.s32.totalorder %s1772_s27, 0  ;;  %p46_p1 = scmp.ne.s32.totalorder %s1764_s25, %s1760_s24 }
  0x97   : > { %s2022_s17 = scalar_select %p31_p8, %s1768_s26, %s33_s16  }
  0x98   : > { %p2024_p3 = por %p41_p0, %p40_p13  ;;  %p2253_p2 = scmp.eq.s32.totalorder %s1847_s30, 0 }
  0x99   : > { %p196_p5 = scmp.eq.s32.totalorder %s1847_s30, 1  ;;  %p202_p7 = scmp.eq.s32.totalorder %s1142_s19, 1 }
  0x9a   : > { %p2030_p6 = por %p2253_p2, %p46_p1  ;;  %p1418_p9 = scmp.lt.s32.totalorder %s1772_s27, 2 }
  0x9b   : > { %s294_s20 = sand.u32 1, %s1768_s26   ;;  %p2037_p4 = por %p196_p5, %p40_p13 }
  0x9c   : > { %p2041_p10 = por %p202_p7, %p46_p1  ;;  %s1151_s13 = sshll.u32 %s294_s20, 6 }
  0x9d   : > { %s2255_s10 = scalar_select %p2037_p4, 1, 0 }
  0x9e   : > { %s2256_s21 = scalar_select %p2041_p10, 1, 0 }
  0x9f   : > { %s1207_s14 = sshll.u32 %s1772_s27, 10  ;;  %s298_s19 = scalar_lea.vmem [#allocation2], %s1151_s13 }
  0xa0   : > { %s2049_s22 = scalar_lea.hbm %s2237_s0, %s1207_s14  ;;  %s305_s12 = sshll.u32 %s298_s19, 4  ;;  %s2051_s12 = int_to_ptr.vmem [resolvable:$true] %s305_s12 }
  0xa1   : > { %p2055_p11 = pnand %p1418_p9, %p2024_p3  ;;  %s2059_s23 = scalar_lea.sflag [#allocation3], %s294_s20 }
  0xa2   : > { %s1664_s9 = scalar_lea.hbm %s2049_s22, 1024  ;;  %s1669_s18 = scalar_lea.hbm %s2237_s0, 2048 }
  0xa3   : > { %p1665_p12 = scmp.ne.s32.totalorder %s2049_s22, %s1664_s9  ;;  %p1666_p8 = pneg %p2055_p11 }
  0xa4   : > { %p1670_p1 = scmp.lt.u32.totalorder %s2049_s22, %s2237_s0  ;;  %p1671_p3 = scmp.lt.u32.totalorder %s1669_s18, %s1664_s9 }
  0xa5   : > { %p1667_p13 = pnand %p1666_p8, %p1665_p12  ;;  %p1673_p5 = scmp.lt.u32.totalorder %s1664_s9, %s2049_s22 }
  0xa6   : > { %p1672_p2 = por %p1671_p3, %p1670_p1 }
  0xa7   : > { %p1668_p0 = pneg %p1667_p13 }
  0xa8   : > { %p1674_p7 = por %p1673_p5, %p1672_p2 }
  0xaa   : > { %p1675_p9 = pnand %p1674_p7, %p1668_p0 }
  0xac   : > { %1678 = shalt.err (!%p1675_p9)
}
  0xad   : > { %s1679_s20 = scalar_lea.vmem %s2051_s12, 1024  ;;  %s1782_s13 = smov [#allocation2]  }
  0xae   : > { %p1680_p12 = scmp.ne.s32.totalorder %s2051_s12, %s1679_s20  ;;  %s1684_s14 = sshll.u32 %s1782_s13, 4  ;;  %s1685_s14 = int_to_ptr.vmem [resolvable:$false] %s1684_s14 }
  0xaf   : > { %s1686_s29 = scalar_lea.vmem %s1685_s14, 2048  ;;  %p1687_p4 = scmp.lt.s32.totalorder %s2051_s12, %s1685_s14 }
  0xb0   : > { %p1682_p13 = pnand %p1680_p12, %p1666_p8  ;;  %p1688_p1 = scmp.lt.s32.totalorder %s1686_s29, %s1679_s20 }
  0xb2   : > { %p1683_p10 = pneg %p1682_p13  ;;  %p1689_p3 = por %p1688_p1, %p1687_p4 }
  0xb4   : > { %p1690_p2 = pnand %p1689_p3, %p1683_p10 }
  0xb6   : > { %1693 = shalt.err (!%p1690_p2)
}
  0xb7   : > { %s2258_s9 = smov 64   ;;  %p2259_p8 = scmp.ne.s32.totalorder %s2249_s8, 0 }
  0xb8   : > { %1407 = dma.hbm_to_vmem [thread:$0]  (!%p2055_p11), %s2049_s22, 1024, %s2051_s12, %s2059_s23, %s2258_s9, %s2258_s9, %s1778_s28  }
  0xb9   : > { %317 = sbr.rel (%p2259_p8) target bundleno = 920 (0x398), region = 48  ;;  %s2093_s18 = sand.u32 (!%p2259_p8), 1, %s1764_s25  }
  0xba   : > { %s1155_s19 = sshll.u32 (!%p2259_p8), %s2093_s18, 6  ;;  %s320_s20 = scalar_lea.sflag (!%p2259_p8), [#allocation3], %s2093_s18 }
  0xbb   : > { %s2097_s13 = scalar_lea.vmem (!%p2259_p8), [#allocation2], %s1155_s19 }
  0xc0   : > { %1739 = dma.done.wait (%p2030_p6), %s320_s20, 1024  }
  0xc1   : > { %1741 = vsyncadd (%p2030_p6), %s320_s20, 4294966272  ;;  %p2260_p4 = scmp.eq.s32.totalorder %s1847_s30, 0 }
  0xc3   : > { %1743 = dma.done.wait (%p2260_p4), [#allocation6], 528   ;;  %p2261_p10 = pmov %p2260_p4 }
  0xc4   : > { %p2262_p11 = pmov %p2260_p4 }
  0xc5   : > { %1745 = vsyncadd (%p2261_p10), [#allocation6], 4294966768 }
  0xc6   : > { %1747 = dma.done.wait (%p2262_p11), [#allocation9], 1040   ;;  %p2263_p0 = pmov %p2260_p4 }
  0xc8   : > { %1749 = vsyncadd (%p2263_p0), [#allocation9], 4294966256  ;;  %p2264_p5 = pmov %p2263_p0 }
  0xc9   : > { %p2265_p7 = pmov %p2263_p0 }
  0xca   : > { %1751 = dma.done.wait (%p2264_p5), [#allocation12], 1040  }
  0xcb   : > { %1753 = vsyncadd (%p2265_p7), [#allocation12], 4294966256  ;;  %v1468_v0 = vld [vmem:[#allocation5] sm:$0xff]   ;;  %v1469_v1 = vld [vmem:[#allocation5 + $0x8] sm:$0xff]   ;;  %vm476_vm0 = vcmask 523264   ;;  %s1162_s8 = sshll.u32 %s2093_s18, 7 }
  0xcc   : > { %1253 = vmatprep.subr.bf16.mxu0 %v1468_v0  ;;  %v1470_v2 = vld [vmem:[#allocation5 + $0x10] sm:$0xff]   ;;  %v1472_v3 = vld [vmem:[%s2097_s13] sm:$0xff]   ;;  %v1471_v4 = vld [vmem:[#allocation5 + $0x18] sm:$0xff]   ;;  %s2168_s23 = scalar_lea.vmem [#allocation14], %s1162_s8  ;;  %s1208_s28 = sshll.u32 %s1847_s30, 11 }
  0xcd   : > { %1254 = vmatpush3.bf16.msra.mxu0 %v1468_v0  ;;  %1261 = vmatprep.mubr.msk.bf16.mxu0 %vm476_vm0, %v1472_v3  ;;  %v1480_v5 = vld [vmem:[#allocation8] sm:$0xff]   ;;  %v1481_v6 = vld [vmem:[#allocation8 + $0x8] sm:$0xff]   ;;  %v1482_v9 = vld [vmem:[#allocation8 + $0x10] sm:$0xff]   ;;  %s1012_s15 = sshll.u32 %s2168_s23, 4  ;;  %s2188_s16 = scalar_lea.hbm %s2244_s7, %s1208_s28  ;;  %s2190_s15 = int_to_ptr.vmem [resolvable:$true] %s1012_s15 }
  0xce   : > { %1255 = vmatprep.subr.bf16.mxu0 %v1469_v1  ;;  %v1473_v7 = vld [vmem:[%s2097_s13 + $0x8] sm:$0xff]   ;;  %1277 = vmatprep.subr.bf16.mxu1 %v1480_v5  ;;  %v1474_v8 = vld [vmem:[%s2097_s13 + $0x10] sm:$0xff]   ;;  %v1483_v10 = vld [vmem:[#allocation8 + $0x18] sm:$0xff]   ;;  %s999_s30 = scalar_lea.sflag [#allocation4], %s2093_s18  ;;  %s1694_s14 = scalar_lea.vmem %s2190_s15, 2048 }
  0xcf   : > { %1278 = vmatpush3.bf16.msra.mxu1 %v1480_v5  ;;  %v1475_v11 = vld [vmem:[%s2097_s13 + $0x18] sm:$0xff]   ;;  %v1476_v12 = vld [vmem:[%s2097_s13 + $0x20] sm:$0xff]   ;;  %v1485_v14 = vld [vmem:[#allocation8 + $0x28] sm:$0xff]   ;;  %p1695_p6 = scmp.ne.s32.totalorder %s2190_s15, %s1694_s14  ;;  %p2266_p9 = scmp.ne.s32.totalorder %s2255_s10, 0 }
  0xd0   : > { %1279 = vmatprep.subr.bf16.mxu1 %v1481_v6  ;;  %v1484_v13 = vld [vmem:[#allocation8 + $0x20] sm:$0xff]   ;;  %v1478_v16 = vld [vmem:[%s2097_s13 + $0x30] sm:$0xff]   ;;  %v1479_v17 = vld [vmem:[%s2097_s13 + $0x38] sm:$0xff]   ;;  %s1783_s29 = smov [#allocation14]  }
  0xd1   : > { %1256 = vmatpush3.bf16.msra.mxu0 %v1469_v1  ;;  %v1477_v15 = vld [vmem:[%s2097_s13 + $0x28] sm:$0xff]   ;;  %v1486_v18 = vld [vmem:[#allocation8 + $0x30] sm:$0xff]   ;;  %v1487_v19 = vld [vmem:[#allocation8 + $0x38] sm:$0xff]   ;;  %p1696_p12 = pnand %p1695_p6, %p2266_p9  ;;  %s1698_s9 = sshll.u32 %s1783_s29, 4  ;;  %s1699_s9 = int_to_ptr.vmem [resolvable:$false] %s1698_s9 }
  0xd2   : > { %1257 = vmatprep.subr.bf16.mxu0 %v1470_v2  ;;  %v1488_v20 = vld [vmem:[#allocation11] sm:$0xff]   ;;  %v1489_v21 = vld [vmem:[#allocation11 + $0x8] sm:$0xff]   ;;  %v1490_v22 = vld [vmem:[#allocation11 + $0x10] sm:$0xff]   ;;  %s1700_s19 = scalar_lea.vmem %s1699_s9, 4096  ;;  %p1701_p1 = scmp.lt.s32.totalorder %s2190_s15, %s1699_s9 }
  0xd3   : > { %1280 = vmatpush3.bf16.msra.mxu1 %v1481_v6  ;;  %v2131_v23 = vld [vmem:[#allocation11 + $0x18] sm:$0xff]   ;;  %v2134_v24 = vld [vmem:[#allocation11 + $0x20] sm:$0xff]   ;;  %v2138_v25 = vld [vmem:[#allocation11 + $0x28] sm:$0xff]   ;;  %p1697_p13 = pneg %p1696_p12  ;;  %p1702_p3 = scmp.lt.s32.totalorder %s1700_s19, %s1694_s14 }
  0xd4   : > { %1281 = vmatprep.subr.bf16.mxu1 %v1482_v9  ;;  %v2143_v26 = vld [vmem:[#allocation7] ss:$0 sm:$0xff] }
  0xd5   : > { %1258 = vmatpush3.bf16.msra.mxu0 %v1470_v2  ;;  %p1703_p2 = por %p1702_p3, %p1701_p1 }
  0xd6   : > { %1259 = vmatprep.subr.bf16.mxu0 %v1471_v4 }
  0xd7   : > { %1282 = vmatpush3.bf16.msra.mxu1 %v1482_v9  ;;  %p1704_p8 = pnand %p1703_p2, %p1697_p13 }
  0xd8   : > { %1283 = vmatprep.subr.bf16.mxu1 %v1483_v10 }
  0xd9   : > { %1260 = vmatpush3.bf16.msra.mxu0 %v1471_v4 }
  0xda   : > { %1309 = vmatprep.subr.bf16.mxu0 %v1488_v20 }
  0xdb   : > { %1284 = vmatpush3.bf16.msra.mxu1 %v1483_v10 }
  0xdc   : > { %1262 = vmatmul.mubr.msk.bf16.vlgmr.msra.gmra.mrb[0].mxu0 %vm476_vm0, %v1473_v7  ;;  %1285 = vmatprep.subr.bf16.mxu1 %v1484_v13 }
  0xdd   : > { %1265 = vmatprep.mubr.msk.bf16.mxu0 %vm476_vm0, %v1474_v8  ;;  %1310 = vmatpush3.bf16.msra.mxu0 %v1488_v20 }
  0xde   : > { %1311 = vmatprep.subr.bf16.mxu0 %v1489_v21 }
  0xdf   : > { %1286 = vmatpush3.bf16.msra.mxu1 %v1484_v13 }
  0xe0   : > { %1287 = vmatprep.subr.bf16.mxu1 %v1485_v14 }
  0xe1   : > { %1312 = vmatpush3.bf16.msra.mxu0 %v1489_v21 }
  0xe2   : > { %1313 = vmatprep.subr.bf16.mxu0 %v1490_v22 }
  0xe3   : > { %1288 = vmatpush3.bf16.msra.mxu1 %v1485_v14 }
  0xe4   : > { %1266 = vmatmul.mubr.msk.bf16.gmra.mrb[4].mxu0 %vm476_vm0, %v1475_v11  ;;  %1289 = vmatprep.subr.bf16.mxu1 %v1486_v18 }
  0xe5   : > { %1269 = vmatprep.mubr.msk.bf16.mxu0 %vm476_vm0, %v1476_v12  ;;  %1314 = vmatpush3.bf16.msra.mxu0 %v1490_v22 }
  0xe6   : > { %1315 = vmatprep.subr.bf16.mxu0 %v2131_v23 }
  0xe7   : > { %1290 = vmatpush3.bf16.msra.mxu1 %v1486_v18 }
  0xe8   : > { %1291 = vmatprep.subr.bf16.mxu1 %v1487_v19 }
  0xe9   : > { %1316 = vmatpush3.bf16.msra.mxu0 %v2131_v23 }
  0xea   : > { %1317 = vmatprep.subr.bf16.mxu0 %v2134_v24 }
  0xeb   : > { %1292 = vmatpush3.bf16.msra.mxu1 %v1487_v19  ;;  %v1494_v19 = vld [vmem:[#allocation11 + $0x30] sm:$0xff]  }
  0xec   : > { %1270 = vmatmul.mubr.msk.bf16.gmra.mrb[8].mxu0 %vm476_vm0, %v1477_v15  ;;  %1341 = vmatprep.subr.bf16.mxu1 %v1488_v20 }
  0xed   : > { %1273 = vmatprep.mubr.msk.bf16.mxu0 %vm476_vm0, %v1478_v16  ;;  %1318 = vmatpush3.bf16.msra.mxu0 %v2134_v24 }
  0xee   : > { %1319 = vmatprep.subr.bf16.mxu0 %v2138_v25 }
  0xf1   : > { %1320 = vmatpush3.bf16.msra.mxu0 %v2138_v25 }
  0xf2   : > { %1321 = vmatprep.subr.bf16.mxu0 %v1494_v19 }
  0xf4   : > { %1274 = vmatmul.mubr.msk.bf16.gmra.mrb[12].mxu0 %vm476_vm0, %v1479_v17 }
  0xf5   : > { %1322 = vmatpush3.bf16.msra.mxu0 %v1494_v19 }
 0x1af   : > { %v1263_v27 = vpop.f32.mrb[0].mxu0 }
 0x1b0   : > { %v544_v28 = vadd.f32 %v1263_v27, %v2143_v26  ;;  %v535_v29 = vpop.f32.mrb[1].mxu0 }
 0x1b1   : > { %v536_v30 = vadd.f32 %v2143_v26, %v535_v29  ;;  %v1264_v31 = vpop.f32.mrb[2].mxu0 }
 0x1b2   : > { %v547_v32 = vadd.f32 %v1264_v31, %v2143_v26  ;;  %v538_v33 = vpop.f32.mrb[3].mxu0  ;;  %v600_v35 = vmax.f32 %v544_v28, 0.0 }
 0x1b3   : > { %v539_v34 = vadd.f32 %v2143_v26, %v538_v33  ;;  %v598_v37 = vmax.f32 %v536_v30, 0.0 }
 0x1b4   : > { %v601_v36 = vmax.f32 %v547_v32, 0.0 }
 0x1b5   : > { %v599_v38 = vmax.f32 %v539_v34, 0.0 }
 0x1b6   : > { %v615_v39 = vpack.c.bf16 %v601_v36, %v600_v35 }
 0x1b7   : > { %v1267_v40 = vpop.f32.mrb[4].mxu0  ;;  %v614_v41 = vpack.c.bf16 %v599_v38, %v598_v37 }
 0x1b8   : > { %v560_v42 = vadd.f32 %v1267_v40, %v2143_v26  ;;  %v551_v43 = vpop.f32.mrb[5].mxu0 }
 0x1b9   : > { %v552_v44 = vadd.f32 %v2143_v26, %v551_v43  ;;  %v1268_v45 = vpop.f32.mrb[6].mxu0  ;;  %1293 = vmatprep.mubr.bf16.mxu1 %v614_v41 }
 0x1ba   : > { %v563_v46 = vadd.f32 %v1268_v45, %v2143_v26  ;;  %v554_v47 = vpop.f32.mrb[7].mxu0  ;;  %1294 = vmatmul.mubr.bf16.vlgmr.msra.gmra.mrb[0].mxu1 %v615_v39  ;;  %v604_v49 = vmax.f32 %v560_v42, 0.0 }
 0x1bb   : > { %v555_v48 = vadd.f32 %v2143_v26, %v554_v47  ;;  %1349 = vmatpush3.bf16.msra.mxu1 %v1488_v20  ;;  %v602_v51 = vmax.f32 %v552_v44, 0.0  ;;  %v1495_v20 = vld [vmem:[#allocation11 + $0x38] sm:$0xff]  }
 0x1bc   : > { %v605_v50 = vmax.f32 %v563_v46, 0.0  ;;  %1342 = vmatprep.subr.bf16.mxu1 %v1489_v21  ;;  %1323 = vmatprep.subr.bf16.mxu0 %v1495_v20 }
 0x1bd   : > { %v603_v52 = vmax.f32 %v555_v48, 0.0  ;;  %1324 = vmatpush3.bf16.msra.mxu0 %v1495_v20 }
 0x1be   : > { %v617_v53 = vpack.c.bf16 %v605_v50, %v604_v49 }
 0x1bf   : > { %v616_v54 = vpack.c.bf16 %v603_v52, %v602_v51  ;;  %v1271_v55 = vpop.f32.mrb[8].mxu0  ;;  %1350 = vmatpush3.bf16.msra.mxu1 %v1489_v21  ;;  %v1184_v21 = vld [vmem:[#allocation10] ss:$0 sm:$0xff] }
 0x1c0   : > { %v576_v56 = vadd.f32 %v1271_v55, %v2143_v26  ;;  %v567_v57 = vpop.f32.mrb[9].mxu0  ;;  %1343 = vmatprep.subr.bf16.mxu1 %v1490_v22 }
 0x1c1   : > { %v568_v58 = vadd.f32 %v2143_v26, %v567_v57  ;;  %v1272_v59 = vpop.f32.mrb[10].mxu0  ;;  %1297 = vmatprep.mubr.bf16.mxu1 %v616_v54 }
 0x1c2   : > { %v579_v60 = vadd.f32 %v1272_v59, %v2143_v26  ;;  %v570_v61 = vpop.f32.mrb[11].mxu0  ;;  %1298 = vmatmul.mubr.bf16.gmra.mrb[4].mxu1 %v617_v53  ;;  %v608_v63 = vmax.f32 %v576_v56, 0.0 }
 0x1c3   : > { %v571_v62 = vadd.f32 %v2143_v26, %v570_v61  ;;  %1351 = vmatpush3.bf16.msra.mxu1 %v1490_v22  ;;  %v606_v1 = vmax.f32 %v568_v58, 0.0 }
 0x1c4   : > { %v609_v0 = vmax.f32 %v579_v60, 0.0  ;;  %1344 = vmatprep.subr.bf16.mxu1 %v2131_v23 }
 0x1c5   : > { %v607_v2 = vmax.f32 %v571_v62, 0.0 }
 0x1c6   : > { %v619_v3 = vpack.c.bf16 %v609_v0, %v608_v63 }
 0x1c7   : > { %v618_v4 = vpack.c.bf16 %v607_v2, %v606_v1  ;;  %v1275_v5 = vpop.f32.mrb[12].mxu0  ;;  %1352 = vmatpush3.bf16.msra.mxu1 %v2131_v23 }
 0x1c8   : > { %v592_v6 = vadd.f32 %v1275_v5, %v2143_v26  ;;  %v583_v7 = vpop.f32.mrb[13].mxu0  ;;  %1345 = vmatprep.subr.bf16.mxu1 %v2134_v24 }
 0x1c9   : > { %v584_v8 = vadd.f32 %v2143_v26, %v583_v7  ;;  %v1276_v9 = vpop.f32.mrb[14].mxu0  ;;  %1301 = vmatprep.mubr.bf16.mxu1 %v618_v4 }
 0x1ca   : > { %v595_v10 = vadd.f32 %v1276_v9, %v2143_v26  ;;  %v586_v11 = vpop.f32.mrb[15].mxu0  ;;  %1302 = vmatmul.mubr.bf16.gmra.mrb[8].mxu1 %v619_v3  ;;  %v612_v13 = vmax.f32 %v592_v6, 0.0 }
 0x1cb   : > { %v587_v12 = vadd.f32 %v2143_v26, %v586_v11  ;;  %1353 = vmatpush3.bf16.msra.mxu1 %v2134_v24  ;;  %v610_v15 = vmax.f32 %v584_v8, 0.0 }
 0x1cc   : > { %v613_v14 = vmax.f32 %v595_v10, 0.0  ;;  %1346 = vmatprep.subr.bf16.mxu1 %v2138_v25 }
 0x1cd   : > { %v611_v16 = vmax.f32 %v587_v12, 0.0 }
 0x1ce   : > { %v621_v17 = vpack.c.bf16 %v613_v14, %v612_v13  ;;  %v1193_v14 = vld [vmem:[#allocation13] ss:$0 sm:$0xff] }
 0x1cf   : > { %v620_v18 = vpack.c.bf16 %v611_v16, %v610_v15  ;;  %1354 = vmatpush3.bf16.msra.mxu1 %v2138_v25 }
 0x1d0   : > { %1347 = vmatprep.subr.bf16.mxu1 %v1494_v19 }
 0x1d1   : > { %1305 = vmatprep.mubr.bf16.mxu1 %v620_v18 }
 0x1d2   : > { %1306 = vmatmul.mubr.bf16.gmra.mrb[12].mxu1 %v621_v17 }
 0x1d3   : > { %1355 = vmatpush3.bf16.msra.mxu1 %v1494_v19 }
 0x1d4   : > { %1348 = vmatprep.subr.bf16.mxu1 %v1495_v20 }
 0x1d7   : > { %1356 = vmatpush3.bf16.msra.mxu1 %v1495_v20 }
 0x28d   : > { %v1295_v22 = vpop.f32.mrb[0].mxu1 }
 0x28e   : > { %v736_v23 = vadd.f32 %v1295_v22, %v1184_v21  ;;  %v727_v24 = vpop.f32.mrb[1].mxu1 }
 0x28f   : > { %v728_v26 = vadd.f32 %v1184_v21, %v727_v24  ;;  %v1296_v27 = vpop.f32.mrb[2].mxu1 }
 0x290   : > { %v739_v28 = vadd.f32 %v1296_v27, %v1184_v21  ;;  %v730_v25 = vpop.f32.mrb[3].mxu1  ;;  %v792_v30 = vmax.f32 %v736_v23, 0.0 }
 0x291   : > { %v731_v29 = vadd.f32 %v1184_v21, %v730_v25  ;;  %v790_v32 = vmax.f32 %v728_v26, 0.0 }
 0x292   : > { %v793_v31 = vmax.f32 %v739_v28, 0.0 }
 0x293   : > { %v791_v33 = vmax.f32 %v731_v29, 0.0 }
 0x294   : > { %v807_v34 = vpack.c.bf16 %v793_v31, %v792_v30 }
 0x295   : > { %v806_v35 = vpack.c.bf16 %v791_v33, %v790_v32  ;;  %v1299_v36 = vpop.f32.mrb[4].mxu1 }
 0x296   : > { %v752_v37 = vadd.f32 %v1299_v36, %v1184_v21  ;;  %v743_v38 = vpop.f32.mrb[5].mxu1 }
 0x297   : > { %v744_v39 = vadd.f32 %v1184_v21, %v743_v38  ;;  %v1300_v40 = vpop.f32.mrb[6].mxu1  ;;  %1325 = vmatprep.mubr.bf16.mxu0 %v806_v35 }
 0x298   : > { %v755_v41 = vadd.f32 %v1300_v40, %v1184_v21  ;;  %v746_v42 = vpop.f32.mrb[7].mxu1  ;;  %1326 = vmatmul.mubr.bf16.vlgmr.msra.gmra.mrb[16].mxu0 %v807_v34  ;;  %v796_v44 = vmax.f32 %v752_v37, 0.0 }
 0x299   : > { %v747_v43 = vadd.f32 %v1184_v21, %v746_v42  ;;  %v794_v46 = vmax.f32 %v744_v39, 0.0 }
 0x29a   : > { %v797_v45 = vmax.f32 %v755_v41, 0.0 }
 0x29b   : > { %v795_v47 = vmax.f32 %v747_v43, 0.0 }
 0x29c   : > { %v809_v48 = vpack.c.bf16 %v797_v45, %v796_v44 }
 0x29d   : > { %v808_v49 = vpack.c.bf16 %v795_v47, %v794_v46  ;;  %v1303_v50 = vpop.f32.mrb[8].mxu1 }
 0x29e   : > { %v768_v51 = vadd.f32 %v1303_v50, %v1184_v21  ;;  %v759_v52 = vpop.f32.mrb[9].mxu1 }
 0x29f   : > { %v760_v53 = vadd.f32 %v1184_v21, %v759_v52  ;;  %v1304_v54 = vpop.f32.mrb[10].mxu1  ;;  %1329 = vmatprep.mubr.bf16.mxu0 %v808_v49 }
 0x2a0   : > { %v771_v55 = vadd.f32 %v1304_v54, %v1184_v21  ;;  %v762_v56 = vpop.f32.mrb[11].mxu1  ;;  %1330 = vmatmul.mubr.bf16.gmra.mrb[20].mxu0 %v809_v48  ;;  %v800_v58 = vmax.f32 %v768_v51, 0.0 }
 0x2a1   : > { %v763_v57 = vadd.f32 %v1184_v21, %v762_v56  ;;  %v798_v60 = vmax.f32 %v760_v53, 0.0 }
 0x2a2   : > { %v801_v59 = vmax.f32 %v771_v55, 0.0 }
 0x2a3   : > { %v799_v61 = vmax.f32 %v763_v57, 0.0 }
 0x2a4   : > { %v811_v62 = vpack.c.bf16 %v801_v59, %v800_v58 }
 0x2a5   : > { %v810_v63 = vpack.c.bf16 %v799_v61, %v798_v60  ;;  %v1307_v0 = vpop.f32.mrb[12].mxu1 }
 0x2a6   : > { %v784_v1 = vadd.f32 %v1307_v0, %v1184_v21  ;;  %v775_v2 = vpop.f32.mrb[13].mxu1 }
 0x2a7   : > { %v776_v3 = vadd.f32 %v1184_v21, %v775_v2  ;;  %v1308_v4 = vpop.f32.mrb[14].mxu1  ;;  %1333 = vmatprep.mubr.bf16.mxu0 %v810_v63 }
 0x2a8   : > { %v787_v5 = vadd.f32 %v1308_v4, %v1184_v21  ;;  %v778_v6 = vpop.f32.mrb[15].mxu1  ;;  %1334 = vmatmul.mubr.bf16.gmra.mrb[24].mxu0 %v811_v62  ;;  %v804_v8 = vmax.f32 %v784_v1, 0.0 }
 0x2a9   : > { %v779_v7 = vadd.f32 %v1184_v21, %v778_v6  ;;  %v802_v10 = vmax.f32 %v776_v3, 0.0 }
 0x2aa   : > { %v805_v9 = vmax.f32 %v787_v5, 0.0 }
 0x2ab   : > { %v803_v11 = vmax.f32 %v779_v7, 0.0 }
 0x2ac   : > { %v813_v12 = vpack.c.bf16 %v805_v9, %v804_v8 }
 0x2ad   : > { %v812_v13 = vpack.c.bf16 %v803_v11, %v802_v10 }
 0x2af   : > { %1337 = vmatprep.mubr.bf16.mxu1 %v812_v13 }
 0x2b0   : > { %1338 = vmatmul.mubr.bf16.vlgmr.msra.gmra.mrb[16].mxu1 %v813_v12 }
 0x36b   : > { %v1327_v15 = vpop.f32.mrb[16].mxu0 }
 0x36c   : > { %v928_v16 = vadd.f32 %v1327_v15, %v1193_v14  ;;  %v919_v17 = vpop.f32.mrb[17].mxu0 }
 0x36d   : > { %v920_v18 = vadd.f32 %v1193_v14, %v919_v17  ;;  %v1328_v19 = vpop.f32.mrb[18].mxu0 }
 0x36e   : > { %984 = vst [vmem:[%s2168_s23 + $0x10] sm:$0xff] %v928_v16  ;;  %v931_v20 = vadd.f32 %v1328_v19, %v1193_v14  ;;  %v922_v21 = vpop.f32.mrb[19].mxu0 }
 0x36f   : > { %982 = vst [vmem:[%s2168_s23] sm:$0xff] %v920_v18  ;;  %v923_v22 = vadd.f32 %v1193_v14, %v922_v21 }
 0x370   : > { %985 = vst [vmem:[%s2168_s23 + $0x18] sm:$0xff] %v931_v20 }
 0x371   : > { %983 = vst [vmem:[%s2168_s23 + $0x8] sm:$0xff] %v923_v22 }
 0x373   : > { %v1331_v23 = vpop.f32.mrb[20].mxu0 }
 0x374   : > { %v944_v24 = vadd.f32 %v1331_v23, %v1193_v14  ;;  %v935_v26 = vpop.f32.mrb[21].mxu0 }
 0x375   : > { %v936_v27 = vadd.f32 %v1193_v14, %v935_v26  ;;  %v1332_v28 = vpop.f32.mrb[22].mxu0 }
 0x376   : > { %988 = vst [vmem:[%s2168_s23 + $0x30] sm:$0xff] %v944_v24  ;;  %v947_v25 = vadd.f32 %v1332_v28, %v1193_v14  ;;  %v938_v29 = vpop.f32.mrb[23].mxu0 }
 0x377   : > { %986 = vst [vmem:[%s2168_s23 + $0x20] sm:$0xff] %v936_v27  ;;  %v939_v30 = vadd.f32 %v1193_v14, %v938_v29 }
 0x378   : > { %989 = vst [vmem:[%s2168_s23 + $0x38] sm:$0xff] %v947_v25 }
 0x379   : > { %987 = vst [vmem:[%s2168_s23 + $0x28] sm:$0xff] %v939_v30 }
 0x37b   : > { %v1335_v31 = vpop.f32.mrb[24].mxu0 }
 0x37c   : > { %v960_v32 = vadd.f32 %v1335_v31, %v1193_v14  ;;  %v951_v33 = vpop.f32.mrb[25].mxu0 }
 0x37d   : > { %v952_v34 = vadd.f32 %v1193_v14, %v951_v33  ;;  %v1336_v35 = vpop.f32.mrb[26].mxu0 }
 0x37e   : > { %992 = vst [vmem:[%s2168_s23 + $0x50] sm:$0xff] %v960_v32  ;;  %v963_v36 = vadd.f32 %v1336_v35, %v1193_v14  ;;  %v954_v37 = vpop.f32.mrb[27].mxu0 }
 0x37f   : > { %990 = vst [vmem:[%s2168_s23 + $0x40] sm:$0xff] %v952_v34  ;;  %v955_v38 = vadd.f32 %v1193_v14, %v954_v37 }
 0x380   : > { %993 = vst [vmem:[%s2168_s23 + $0x58] sm:$0xff] %v963_v36 }
 0x381   : > { %991 = vst [vmem:[%s2168_s23 + $0x48] sm:$0xff] %v955_v38 }
 0x383   : > { %v1339_v39 = vpop.f32.mrb[16].mxu1 }
 0x384   : > { %v976_v40 = vadd.f32 %v1339_v39, %v1193_v14  ;;  %v967_v41 = vpop.f32.mrb[17].mxu1 }
 0x385   : > { %v968_v42 = vadd.f32 %v1193_v14, %v967_v41  ;;  %v1340_v43 = vpop.f32.mrb[18].mxu1 }
 0x386   : > { %996 = vst [vmem:[%s2168_s23 + $0x70] sm:$0xff] %v976_v40  ;;  %v979_v44 = vadd.f32 %v1340_v43, %v1193_v14  ;;  %v970_v45 = vpop.f32.mrb[19].mxu1 }
 0x387   : > { %994 = vst [vmem:[%s2168_s23 + $0x60] sm:$0xff] %v968_v42  ;;  %v971_v46 = vadd.f32 %v1193_v14, %v970_v45 }
 0x388   : > { %997 = vst [vmem:[%s2168_s23 + $0x78] sm:$0xff] %v979_v44 }
 0x389   : > { %995 = vst [vmem:[%s2168_s23 + $0x68] sm:$0xff] %v971_v46 }
 0x38a   : > { %1707 = shalt.err (!%p1704_p8)
}
 0x38b   : > { %s1708_s20 = scalar_lea.hbm %s2188_s16, 2048  ;;  %s1712_s23 = scalar_lea.hbm %s2244_s7, 4096 }
 0x38c   : > { %p1709_p4 = scmp.ne.s32.totalorder %s2188_s16, %s1708_s20  ;;  %p1713_p0 = scmp.lt.u32.totalorder %s2188_s16, %s2244_s7 }
 0x38d   : > { %p1714_p5 = scmp.lt.u32.totalorder %s1712_s23, %s1708_s20  ;;  %p1716_p6 = scmp.lt.u32.totalorder %s1708_s20, %s2188_s16 }
 0x38e   : > { %p1710_p10 = pnand %p1709_p4, %p2266_p9 }
 0x38f   : > { %p1715_p7 = por %p1714_p5, %p1713_p0 }
 0x390   : > { %p1711_p11 = pneg %p1710_p10 }
 0x391   : > { %p1717_p12 = por %p1716_p6, %p1715_p7 }
 0x393   : > { %p1718_p13 = pnand %p1717_p12, %p1711_p11 }
 0x395   : > { %1721 = shalt.err (!%p1718_p13)
}
 0x396   : > { %s1784_s12 = smov 128   ;;  %s1785_s14 = smov 8  }
 0x397   : > { %1383 = dma.vmem_to_hbm [thread:$0]  (%p2266_p9), %s2190_s15, 2048, %s2188_s16, %s999_s30, %s1784_s12, %s1784_s12, %s1785_s14  }
 0x398 PF: > { %s1027_s29 = sand.u32 1, %s1760_s24   ;;  %p2267_p1 = scmp.ne.s32.totalorder %s2256_s21, 0 }
 0x399   : > { %p2268_p3 = scmp.ge.s32.totalorder %s1772_s27, 2  ;;  %s1028_s9 = scalar_lea.sflag [#allocation4], %s1027_s29 }
 0x39b   : > { %p1409_p2 = pnand %p2268_p3, %p2267_p1 }
 0x39d   : > { %1755 = dma.done.wait (!%p1409_p2), %s1028_s9, 2048  }
 0x39e   : > { %1757 = vsyncadd (!%p1409_p2), %s1028_s9, 4294965248  ;;  %p23_p8 = scmp.ge.s32.totalorder %s2011_s11, 4   ;;  %s2269_s24 = smov %s1764_s25 }
 0x39f   : > { %s2270_s25 = smov %s1768_s26  ;;  %s2271_s26 = smov %s2022_s17 }
 0x3a0   : > { %s2272_s27 = smov %s2011_s11  ;;  %25 = sbr.rel (!%p23_p8) target bundleno = 8 (0x8), region = 117 }
 0x3a7   :  { %1033 = vsyncpa [#allocation3], 1 }
 0x3a8   :  { %1035 = vsyncpa [#allocation3 + $0x1], 1 }
 0x3a9   :  { %1036 = vsyncpa [#allocation6], 1 }
 0x3aa   :  { %1037 = vsyncpa [#allocation9], 1 }
 0x3ab   :  { %1038 = vsyncpa [#allocation12], 1 }
 0x3ac   :  { %1039 = vsyncpa [#allocation4], 1 }
 0x3ad   :  { %1041 = vsyncpa [#allocation4 + $0x1], 1 }

</bundles_post_ra>
